<compile_context>
chip_gen: v5e
topology: v5e:2x2
jax: 0.10.0
libtpu: 0.0.40
codegen_flags: <defaults>
</compile_context>

<pallas_src>
import functools
from typing import NamedTuple, Optional

import jax
import jax.numpy as jnp
from jax.experimental import pallas as pl
from jax.experimental.pallas import tpu as pltpu

INT_LIMIT = 1
_LANE = 128     # feature dims padded to a multiple of this (MXU/vreg lane width)
_SUBLANE = 8


def _round_up(x, m):
    return ((x + m - 1) // m) * m


def _vmem_capacity_bytes():
    """Physical VMEM per core; conservative 64 MiB (v7x) if the query fails."""
    try:
        info = pltpu.get_tpu_info()
        cap = getattr(info, "vmem_capacity_bytes", None)
        if cap:
            return int(cap)
    except Exception:
        pass
    return 64 * 1024 * 1024


def _resident_spec():
    # Whole array placed in VMEM once for the duration of the kernel: no
    # grid-step pipelining / double-buffering for constant-index parameters.
    return pl.BlockSpec(memory_space=pltpu.MemorySpace.VMEM)


class PreparedParams(NamedTuple):
    w_in: jax.Array               # (in_dim, Hp)   param_dtype
    b_in: jax.Array               # (1, Hp)        f32
    w_hid: Optional[jax.Array]    # (L, Hp, Hp)    param_dtype (None if L == 0)
    b_hid: Optional[jax.Array]    # (L, 1, Hp)     f32         (None if L == 0)
    w_out: jax.Array              # (Hp, Op)       param_dtype
    b_out: jax.Array              # (1, Op)        f32
    in_dim: int
    out_dim: int


def prepare_params(weights_t, biases, *, param_dtype=jnp.float32):
    """Pad + cast parameters once (hoisted out of the per-call path).

    Args:
      weights_t: transposed torch weights [(in, out), ...]; last = output layer.
      biases: biases [(out,) or (1, out), ...]; last = output layer.
      param_dtype: dtype for the weight matrices fed to the MXU. f32 keeps
        exact module semantics; bf16 halves weight VMEM/HBM bytes and uses the
        bf16-native MXU (helps v5e/v6e/v7x). Biases stay f32.

    Padding feature dims to lane multiples with zeros is an exact no-op for
    Linear + ReLU, and padded output lanes give unmasked (lane-dense) stores.
    """
    num_hidden = len(weights_t) - 1
    in_dim = int(weights_t[0].shape[0])
    hidden = int(weights_t[0].shape[1])
    out_dim = int(weights_t[-1].shape[1])
    hp = _round_up(hidden, _LANE)
    op = _round_up(out_dim, _LANE)

    def pad_w(w, rows, cols):
        w = jnp.asarray(w, jnp.float32)
        w = jnp.pad(w, ((0, rows - w.shape[0]), (0, cols - w.shape[1])))
        return w.astype(param_dtype)

    def pad_b(b, cols):
        b = jnp.asarray(b, jnp.float32).reshape(1, -1)
        return jnp.pad(b, ((0, 0), (0, cols - b.shape[1])))

    # First layer keeps its true input dim so x needs no wrapper-side padding.
    w_in = pad_w(weights_t[0], in_dim, hp)
    b_in = pad_b(biases[0], hp)

    if num_hidden >= 2:
        w_hid = jnp.stack([pad_w(w, hp, hp) for w in weights_t[1:num_hidden]])
        b_hid = jnp.stack([pad_b(b, hp) for b in biases[1:num_hidden]])
    else:
        w_hid = None
        b_hid = None

    w_out = pad_w(weights_t[-1], hp, op)
    b_out = pad_b(biases[-1], op)
    return PreparedParams(w_in, b_in, w_hid, b_hid, w_out, b_out, in_dim, out_dim)


# ----------------------------------------------------------------------------
# Kernels
# ----------------------------------------------------------------------------
def _layer(h, w, b):
    """Linear with f32 MXU accumulation + f32 bias add."""
    return jnp.dot(h.astype(w.dtype), w, preferred_element_type=jnp.float32) + b


def _resident_kernel(num_stacked, act_dtype, x_ref, *refs):
    """All parameters resident in VMEM; one batch tile per grid step."""
    o_ref = refs[-1]
    if num_stacked > 0:
        w_in_ref, b_in_ref, w_hid_ref, b_hid_ref, w_out_ref, b_out_ref = refs[:-1]
    else:
        w_in_ref, b_in_ref, w_out_ref, b_out_ref = refs[:-1]
        w_hid_ref = b_hid_ref = None

    # hidden stack: Linear + ReLU; cast back to act_dtype once per layer.
    h = jnp.maximum(_layer(x_ref[...], w_in_ref[...], b_in_ref[...]),
                    0.0).astype(act_dtype)
    for l in range(num_stacked):
        h = jnp.maximum(_layer(h, w_hid_ref[l], b_hid_ref[l]),
                        0.0).astype(act_dtype)

    # output layer + hardtanh(0, 1); out features lane-padded -> dense stores.
    y = _layer(h, w_out_ref[...], b_out_ref[...])
    o_ref[...] = jnp.clip(y, 0.0, 1.0).astype(o_ref.dtype)


def _stream_kernel(act_dtype, x_ref, w_in_ref, b_in_ref, w_hid_ref, b_hid_ref,
                   w_out_ref, b_out_ref, o_ref, h_ref):
    """Layer-streaming: grid = (batch tiles, stacked hidden layers).

    Only one (double-buffered) stacked layer weight is live; the activation
    tile lives in a VMEM scratch that persists across the layer axis.
    """
    l = pl.program_id(1)

    @pl.when(l == 0)
    def _():
        h0 = _layer(x_ref[...], w_in_ref[...], b_in_ref[...])
        h_ref[...] = jnp.maximum(h0, 0.0).astype(h_ref.dtype)

    h = _layer(h_ref[...], w_hid_ref[0], b_hid_ref[0])
    h_ref[...] = jnp.maximum(h, 0.0).astype(h_ref.dtype)

    @pl.when(l == pl.num_programs(1) - 1)
    def _():
        y = _layer(h_ref[...], w_out_ref[...], b_out_ref[...])
        o_ref[...] = jnp.clip(y, 0.0, 1.0).astype(o_ref.dtype)


# ----------------------------------------------------------------------------
# Wrapper
# ----------------------------------------------------------------------------
def rand_pwl_forward(x, params: PreparedParams, *, batch_tile=None,
                     force_stream=False):
    """MLP forward pass via a single pallas_call.

    Args:
      x: [B, inputDim] float32.
      params: output of prepare_params (padded/cast once, reused per call).
      batch_tile: rows of x per grid step. Default is generation-aware
        (512 on 128 MiB parts, 256 on 64 MiB parts); small batches use an
        8-row multiple.
      force_stream: force the layer-streaming path (requires >= 2 hidden
        layers); otherwise it is auto-selected when all-resident parameters
        would not fit the VMEM budget or the net is very deep.
    """
    B, in_dim = x.shape
    assert in_dim == params.in_dim, (in_dim, params.in_dim)
    hp = params.w_in.shape[1]
    op = params.w_out.shape[1]
    num_stacked = 0 if params.w_hid is None else int(params.w_hid.shape[0])
    param_dtype = params.w_in.dtype
    act_dtype = jnp.bfloat16 if param_dtype == jnp.bfloat16 else jnp.float32
    p_bytes = jnp.dtype(param_dtype).itemsize
    a_bytes = jnp.dtype(act_dtype).itemsize

    x = x.astype(jnp.float32)

    # ---- VMEM budget (generation-aware, headroom for compiler scratch). ----
    vmem_cap = _vmem_capacity_bytes()
    vmem_ceiling = vmem_cap * 7 // 8

    # ---- batch tile. ----
    if batch_tile is None:
        batch_tile = 512 if vmem_cap >= (96 << 20) else 256
    if B <= _LANE:
        bt = max(_SUBLANE, _round_up(B, _SUBLANE))   # no fake MXU rows
    else:
        bt = max(_LANE, min(_round_up(batch_tile, _LANE), _round_up(B, _LANE)))

    # ---- VMEM estimates (params single-buffered, x/out double-buffered). ----
    param_bytes_core = (params.w_in.size * p_bytes + params.b_in.size * 4 +
                        params.w_out.size * p_bytes + params.b_out.size * 4)
    hid_bytes = 0
    if num_stacked:
        hid_bytes = int(params.w_hid.size) * p_bytes + int(params.b_hid.size) * 4

    def resident_vmem(bt_):
        return (2 * bt_ * in_dim * 4 + 2 * bt_ * op * 4 +
                param_bytes_core + hid_bytes +
                3 * bt_ * max(hp, op, _LANE) * 4)

    def stream_vmem(bt_):
        return (2 * bt_ * in_dim * 4 + 2 * bt_ * op * 4 +
                param_bytes_core +
                2 * (hp * hp * p_bytes + hp * 4) +     # double-buffered layer wts
                bt_ * hp * a_bytes +                   # activation scratch
                3 * bt_ * max(hp, op, _LANE) * 4)

    use_stream = num_stacked >= 1 and (
        force_stream or num_stacked >= 16 or resident_vmem(bt) > vmem_ceiling)
    vmem_need = stream_vmem if use_stream else resident_vmem
    while bt >= 2 * _LANE and vmem_need(bt) > vmem_ceiling:
        bt //= 2
    vmem_limit = int(min(max(vmem_need(bt) + (4 << 20), 32 << 20), vmem_ceiling))

    grid_b = pl.cdiv(B, bt)

    # ---- cost estimate (helps XLA schedule around the custom call). ----
    flops = 2 * B * (in_dim * hp + num_stacked * hp * hp + hp * op)
    bytes_accessed = (B * in_dim * 4 + param_bytes_core + hid_bytes + B * op * 4)
    cost = pl.CostEstimate(flops=int(flops), transcendentals=0,
                           bytes_accessed=int(bytes_accessed))

    if not use_stream:
        operands = [x, params.w_in, params.b_in]
        if num_stacked:
            operands += [params.w_hid, params.b_hid]
        operands += [params.w_out, params.b_out]
        in_specs = ([pl.BlockSpec((bt, in_dim), lambda i: (i, 0))] +
                    [_resident_spec() for _ in range(len(operands) - 1)])
        out_spec = pl.BlockSpec((bt, op), lambda i: (i, 0))
        kernel = functools.partial(_resident_kernel, num_stacked, act_dtype)
        grid = (grid_b,)
        dim_sem = ("parallel",)
        scratch = []
    else:
        operands = [x, params.w_in, params.b_in, params.w_hid, params.b_hid,
                    params.w_out, params.b_out]
        in_specs = [
            pl.BlockSpec((bt, in_dim), lambda i, l: (i, 0)),
            _resident_spec(),                                   # w_in
            _resident_spec(),                                   # b_in
            pl.BlockSpec((1, hp, hp), lambda i, l: (l, 0, 0)),  # streamed layer wt
            pl.BlockSpec((1, 1, hp), lambda i, l: (l, 0, 0)),   # streamed layer b
            _resident_spec(),                                   # w_out
            _resident_spec(),                                   # b_out
        ]
        out_spec = pl.BlockSpec((bt, op), lambda i, l: (i, 0))
        kernel = functools.partial(_stream_kernel, act_dtype)
        grid = (grid_b, num_stacked)
        dim_sem = ("parallel", "arbitrary")
        scratch = [pltpu.VMEM((bt, hp), act_dtype)]

    y = pl.pallas_call(
        kernel,
        out_shape=jax.ShapeDtypeStruct((B, op), jnp.float32),
        grid_spec=pltpu.PrefetchScalarGridSpec(
            num_scalar_prefetch=0,
            grid=grid,
            in_specs=in_specs,
            out_specs=out_spec,
            scratch_shapes=scratch,
        ),
        compiler_params=pltpu.CompilerParams(
            dimension_semantics=dim_sem,
            vmem_limit_bytes=vmem_limit,
        ),
        cost_estimate=cost,
    )(*operands)

    return y[:, :params.out_dim]


# ----------------------------------------------------------------------------
# Init + references (match the torch module)
# ----------------------------------------------------------------------------
def init_params(key, input_dim, hidden_dim, hidden_num, output_dim=1):
    """Deterministic init matching torch: rand(shape) + randint(-1, 2, shape)."""

    def rand_pwl(key, shape):
        k_u, k_i = jax.random.split(key)
        u = jax.random.uniform(k_u, shape, dtype=jnp.float32)
        z = jax.random.randint(k_i, shape, -INT_LIMIT, INT_LIMIT + 1)
        return u + z.astype(jnp.float32)

    weights_t, biases = [], []   # weights stored transposed (in, out); bias (1, out)
    dims = [(input_dim, hidden_dim)] + [(hidden_dim, hidden_dim)
                                        for _ in range(hidden_num - 1)]
    for d_in, d_out in dims:
        key, kw, kb = jax.random.split(key, 3)
        w = rand_pwl(kw, (d_out, d_in))          # torch layout (out, in)
        b = rand_pwl(kb, (d_out,))
        weights_t.append(w.T)
        biases.append(b.reshape(1, d_out))

    key, kw, kb = jax.random.split(key, 3)
    w_out = rand_pwl(kw, (output_dim, hidden_dim))
    b_out = rand_pwl(kb, (output_dim,))
    weights_t.append(w_out.T)
    biases.append(b_out.reshape(1, output_dim))
    return weights_t, biases


def reference_forward(x, weights_t, biases):
    h = x
    for w_t, b in zip(weights_t[:-1], biases[:-1]):
        h = jnp.maximum(h @ w_t + b, 0.0)
    y = h @ weights_t[-1] + biases[-1]
    return jnp.clip(y, 0.0, 1.0)


def reference_forward_lowp(x, weights_t, biases, dtype):
    """Reference mimicking the low-precision kernel path (weights + activations
    in `dtype`, f32 accumulation, f32 bias/ReLU/clip)."""
    h = x.astype(dtype)
    for w_t, b in zip(weights_t[:-1], biases[:-1]):
        y = jnp.dot(h, w_t.astype(dtype), preferred_element_type=jnp.float32)
        h = jnp.maximum(y + b.astype(jnp.float32), 0.0).astype(dtype)
    y = jnp.dot(h, weights_t[-1].astype(dtype), preferred_element_type=jnp.float32)
    return jnp.clip(y + biases[-1].astype(jnp.float32), 0.0, 1.0)


if __name__ == "__main__":
    # Small shapes consistent with the module's forward.
    batch = 16
    input_dim = 16
    hidden_dim = 32
    hidden_num = 3
    output_dim = 1

    key = jax.random.PRNGKey(0)
    key, kx = jax.random.split(key)
    x = jax.random.normal(kx, (batch, input_dim), dtype=jnp.float32)
    weights_t, biases = init_params(key, input_dim, hidden_dim, hidden_num,
                                    output_dim)
    y_ref = reference_forward(x, weights_t, biases)

    # 1) f32, all-params-resident path: exact module semantics.
    params_f32 = prepare_params(weights_t, biases, param_dtype=jnp.float32)
    y = jax.block_until_ready(rand_pwl_forward(x, params_f32))
    assert y.shape == (batch, output_dim)
    assert jnp.allclose(y, y_ref, rtol=1e-5, atol=1e-5)

    # 2) layer-streaming path (stacked [L, H, H] weights + layer grid axis).
    y_stream = jax.block_until_ready(
        rand_pwl_forward(x, params_f32, force_stream=True))
    assert y_stream.shape == (batch, output_dim)
    assert jnp.allclose(y_stream, y_ref, rtol=1e-5, atol=1e-5)

    # 3) bf16 weights + bf16 inter-layer activations (perf option on all
    #    generations incl. v5e): tolerance-checked against a bf16-mimicking
    #    reference instead of a finiteness-only check.
    params_bf16 = prepare_params(weights_t, biases, param_dtype=jnp.bfloat16)
    y_bf16 = jax.block_until_ready(rand_pwl_forward(x, params_bf16))
    y_bf16_ref = reference_forward_lowp(x, weights_t, biases, jnp.bfloat16)
    assert y_bf16.shape == (batch, output_dim)
    assert jnp.allclose(y_bf16, y_bf16_ref, rtol=1e-2, atol=1e-2)

    print("KERNEL_OK")
</pallas_src>

<mosaic_0001>
module attributes {stable_mosaic.version = 11 : i64} {
  func.func @_resident_kernel(%arg0: i32, %arg1: memref<16x16xf32, #tpu.memory_space<vmem>>, %arg2: memref<16x128xf32, #tpu.memory_space<vmem>>, %arg3: memref<1x128xf32, #tpu.memory_space<vmem>>, %arg4: memref<2x128x128xf32, #tpu.memory_space<vmem>>, %arg5: memref<2x1x128xf32, #tpu.memory_space<vmem>>, %arg6: memref<128x128xf32, #tpu.memory_space<vmem>>, %arg7: memref<1x128xf32, #tpu.memory_space<vmem>>, %arg8: memref<16x128xf32, #tpu.memory_space<vmem>>) attributes {dimension_semantics = [#tpu.dimension_semantics<parallel>], iteration_bounds = array<i64: 1>, scalar_prefetch = 0 : i64, scratch_operands = 0 : i64, tpu.core_type = #tpu.core_type<tc>, window_params = [{transform_indices = @transform_0, window_bounds = array<i64: 16, 16>}, {pipeline_mode = #tpu.pipeline_mode<synchronous>, transform_indices = @transform_1, window_bounds = array<i64: 16, 128>}, {pipeline_mode = #tpu.pipeline_mode<synchronous>, transform_indices = @transform_2, window_bounds = array<i64: 1, 128>}, {pipeline_mode = #tpu.pipeline_mode<synchronous>, transform_indices = @transform_3, window_bounds = array<i64: 2, 128, 128>}, {pipeline_mode = #tpu.pipeline_mode<synchronous>, transform_indices = @transform_4, window_bounds = array<i64: 2, 1, 128>}, {pipeline_mode = #tpu.pipeline_mode<synchronous>, transform_indices = @transform_5, window_bounds = array<i64: 128, 128>}, {pipeline_mode = #tpu.pipeline_mode<synchronous>, transform_indices = @transform_6, window_bounds = array<i64: 1, 128>}, {transform_indices = @transform_7, window_bounds = array<i64: 16, 128>}]} {
    %c0 = arith.constant 0 : index
    %c0_0 = arith.constant 0 : index
    %0 = vector.load %arg1[%c0, %c0_0] : memref<16x16xf32, #tpu.memory_space<vmem>>, vector<16x16xf32>
    %c0_1 = arith.constant 0 : index
    %c0_2 = arith.constant 0 : index
    %1 = vector.load %arg2[%c0_1, %c0_2] : memref<16x128xf32, #tpu.memory_space<vmem>>, vector<16x128xf32>
    %c0_3 = arith.constant 0 : index
    %c0_4 = arith.constant 0 : index
    %2 = vector.load %arg3[%c0_3, %c0_4] : memref<1x128xf32, #tpu.memory_space<vmem>>, vector<1x128xf32>
    %cst = arith.constant dense<0.000000e+00> : vector<16x128xf32>
    %3 = tpu.matmul %0, %1, %cst {dimension_numbers = #tpu.dot_dimension_numbers<[1], [0], [0], [1], [0, 0, 1, 1], [], []>} : vector<16x16xf32>, vector<16x128xf32>, vector<16x128xf32> -> vector<16x128xf32>
    %4 = vector.broadcast %2 : vector<1x128xf32> to vector<16x128xf32>
    %5 = arith.addf %3, %4 : vector<16x128xf32>
    %cst_5 = arith.constant 0.000000e+00 : f32
    %6 = vector.broadcast %cst_5 : f32 to vector<16x128xf32>
    %7 = arith.maximumf %5, %6 : vector<16x128xf32>
    %c0_6 = arith.constant 0 : index
    %c0_7 = arith.constant 0 : index
    %c0_8 = arith.constant 0 : index
    %8 = vector.load %arg4[%c0_6, %c0_7, %c0_8] : memref<2x128x128xf32, #tpu.memory_space<vmem>>, vector<1x128x128xf32>
    %9 = vector.shape_cast %8 : vector<1x128x128xf32> to vector<128x128xf32>
    %c0_9 = arith.constant 0 : index
    %c0_10 = arith.constant 0 : index
    %c0_11 = arith.constant 0 : index
    %10 = vector.load %arg5[%c0_9, %c0_10, %c0_11] : memref<2x1x128xf32, #tpu.memory_space<vmem>>, vector<1x1x128xf32>
    %11 = vector.shape_cast %10 : vector<1x1x128xf32> to vector<1x128xf32>
    %cst_12 = arith.constant dense<0.000000e+00> : vector<16x128xf32>
    %12 = tpu.matmul %7, %9, %cst_12 {dimension_numbers = #tpu.dot_dimension_numbers<[1], [0], [0], [1], [0, 0, 1, 1], [], []>} : vector<16x128xf32>, vector<128x128xf32>, vector<16x128xf32> -> vector<16x128xf32>
    %13 = vector.broadcast %11 : vector<1x128xf32> to vector<16x128xf32>
    %14 = arith.addf %12, %13 : vector<16x128xf32>
    %cst_13 = arith.constant 0.000000e+00 : f32
    %15 = vector.broadcast %cst_13 : f32 to vector<16x128xf32>
    %16 = arith.maximumf %14, %15 : vector<16x128xf32>
    %c1 = arith.constant 1 : index
    %c0_14 = arith.constant 0 : index
    %c0_15 = arith.constant 0 : index
    %17 = vector.load %arg4[%c1, %c0_14, %c0_15] : memref<2x128x128xf32, #tpu.memory_space<vmem>>, vector<1x128x128xf32>
    %18 = vector.shape_cast %17 : vector<1x128x128xf32> to vector<128x128xf32>
    %c1_16 = arith.constant 1 : index
    %c0_17 = arith.constant 0 : index
    %c0_18 = arith.constant 0 : index
    %19 = vector.load %arg5[%c1_16, %c0_17, %c0_18] : memref<2x1x128xf32, #tpu.memory_space<vmem>>, vector<1x1x128xf32>
    %20 = vector.shape_cast %19 : vector<1x1x128xf32> to vector<1x128xf32>
    %cst_19 = arith.constant dense<0.000000e+00> : vector<16x128xf32>
    %21 = tpu.matmul %16, %18, %cst_19 {dimension_numbers = #tpu.dot_dimension_numbers<[1], [0], [0], [1], [0, 0, 1, 1], [], []>} : vector<16x128xf32>, vector<128x128xf32>, vector<16x128xf32> -> vector<16x128xf32>
    %22 = vector.broadcast %20 : vector<1x128xf32> to vector<16x128xf32>
    %23 = arith.addf %21, %22 : vector<16x128xf32>
    %cst_20 = arith.constant 0.000000e+00 : f32
    %24 = vector.broadcast %cst_20 : f32 to vector<16x128xf32>
    %25 = arith.maximumf %23, %24 : vector<16x128xf32>
    %c0_21 = arith.constant 0 : index
    %c0_22 = arith.constant 0 : index
    %26 = vector.load %arg6[%c0_21, %c0_22] : memref<128x128xf32, #tpu.memory_space<vmem>>, vector<128x128xf32>
    %c0_23 = arith.constant 0 : index
    %c0_24 = arith.constant 0 : index
    %27 = vector.load %arg7[%c0_23, %c0_24] : memref<1x128xf32, #tpu.memory_space<vmem>>, vector<1x128xf32>
    %cst_25 = arith.constant dense<0.000000e+00> : vector<16x128xf32>
    %28 = tpu.matmul %25, %26, %cst_25 {dimension_numbers = #tpu.dot_dimension_numbers<[1], [0], [0], [1], [0, 0, 1, 1], [], []>} : vector<16x128xf32>, vector<128x128xf32>, vector<16x128xf32> -> vector<16x128xf32>
    %29 = vector.broadcast %27 : vector<1x128xf32> to vector<16x128xf32>
    %30 = arith.addf %28, %29 : vector<16x128xf32>
    %cst_26 = arith.constant 0.000000e+00 : f32
    %cst_27 = arith.constant 1.000000e+00 : f32
    %31 = vector.broadcast %cst_26 : f32 to vector<16x128xf32>
    %32 = arith.maximumf %31, %30 : vector<16x128xf32>
    %33 = vector.broadcast %cst_27 : f32 to vector<16x128xf32>
    %34 = arith.minimumf %33, %32 : vector<16x128xf32>
    %c0_28 = arith.constant 0 : index
    %c0_29 = arith.constant 0 : index
    %35 = vector.load %arg8[%c0_28, %c0_29] : memref<16x128xf32, #tpu.memory_space<vmem>>, vector<16x128xf32>
    tpu.vector_store %arg8[%c0_28, %c0_29], %34 {strides = array<i32>} : memref<16x128xf32, #tpu.memory_space<vmem>>, vector<16x128xf32>,
    return
  }
  func.func @transform_0(%arg0: i32) -> (i32, i32) {
    %c0_i32 = arith.constant 0 : i32
    %c0_i32_0 = arith.constant 0 : i32
    return %arg0, %c0_i32 : i32, i32
  }
  func.func @transform_1(%arg0: i32) -> (i32, i32) {
    %c0_i32 = arith.constant 0 : i32
    %c0_i32_0 = arith.constant 0 : i32
    %c0_i32_1 = arith.constant 0 : i32
    return %c0_i32, %c0_i32_0 : i32, i32
  }
  func.func @transform_2(%arg0: i32) -> (i32, i32) {
    %c0_i32 = arith.constant 0 : i32
    %c0_i32_0 = arith.constant 0 : i32
    %c0_i32_1 = arith.constant 0 : i32
    return %c0_i32, %c0_i32_0 : i32, i32
  }
  func.func @transform_3(%arg0: i32) -> (i32, i32, i32) {
    %c0_i32 = arith.constant 0 : i32
    %c0_i32_0 = arith.constant 0 : i32
    %c0_i32_1 = arith.constant 0 : i32
    %c0_i32_2 = arith.constant 0 : i32
    return %c0_i32, %c0_i32_0, %c0_i32_1 : i32, i32, i32
  }
  func.func @transform_4(%arg0: i32) -> (i32, i32, i32) {
    %c0_i32 = arith.constant 0 : i32
    %c0_i32_0 = arith.constant 0 : i32
    %c0_i32_1 = arith.constant 0 : i32
    %c0_i32_2 = arith.constant 0 : i32
    return %c0_i32, %c0_i32_0, %c0_i32_1 : i32, i32, i32
  }
  func.func @transform_5(%arg0: i32) -> (i32, i32) {
    %c0_i32 = arith.constant 0 : i32
    %c0_i32_0 = arith.constant 0 : i32
    %c0_i32_1 = arith.constant 0 : i32
    return %c0_i32, %c0_i32_0 : i32, i32
  }
  func.func @transform_6(%arg0: i32) -> (i32, i32) {
    %c0_i32 = arith.constant 0 : i32
    %c0_i32_0 = arith.constant 0 : i32
    %c0_i32_1 = arith.constant 0 : i32
    return %c0_i32, %c0_i32_0 : i32, i32
  }
  func.func @transform_7(%arg0: i32) -> (i32, i32) {
    %c0_i32 = arith.constant 0 : i32
    %c0_i32_0 = arith.constant 0 : i32
    return %arg0, %c0_i32 : i32, i32
  }
}

</mosaic_0001>

<bundles_post_ra>
// kernel: tpu_custom_call.1
= control target key start
LH: loop header
LB: loop body
LE: loop exit
PB: predicated region body
PF: predicated region fallthrough
CT: control target
= control target key end

     0   :  { %12 = vsyncpa [#allocation3], 0  ;;  %s541_s0 = inlined_call_operand.hbm [shape: f32[16,16], index: 0, kind: input, shape index: {}]   ;;  %s542_s1 = inlined_call_operand.hbm [shape: f32[16,128], index: 1, kind: input, shape index: {}]   ;;  %s543_s2 = inlined_call_operand.vmem [shape: f32[1,128], index: 2, kind: input, shape index: {}]   ;;  %s544_s3 = inlined_call_operand.hbm [shape: f32[2,128,128], index: 3, kind: input, shape index: {}]   ;;  %s545_s4 = inlined_call_operand.vmem [shape: f32[2,1,128], index: 4, kind: input, shape index: {}]   ;;  %s546_s5 = inlined_call_operand.hbm [shape: f32[128,128], index: 5, kind: input, shape index: {}]   ;;  %s547_s6 = inlined_call_operand.vmem [shape: f32[1,128], index: 6, kind: input, shape index: {}]   ;;  %s548_s7 = inlined_call_operand.hbm [shape: f32[16,128], index: 7, kind: output, shape index: {}]  }
   0x1   :  { %13 = vsyncpa [#allocation6], 0 }
   0x2   :  { %14 = vsyncpa [#allocation9], 0 }
   0x3   :  { %15 = vsyncpa [#allocation4], 0  ;;  %s33_s26 = sshll.u32 %s542_s1, 4  ;;  %s450_s27 = smov [#allocation5]   ;;  %s34_s26 = int_to_ptr.hbm [resolvable:$true] %s33_s26 }
   0x4   :  { %s35_s28 = sshll.u32 %s450_s27, 4  ;;  %s20_s8 = sshll.u32 %s541_s0, 4  ;;  %s36_s28 = int_to_ptr.vmem [resolvable:$true] %s35_s28  ;;  %s21_s8 = int_to_ptr.hbm [resolvable:$true] %s20_s8 }
   0x5   :  { %s451_s9 = smov 128   ;;  %s452_s10 = smov 8  }
   0x6   :  { %41 = dma.hbm_to_vmem [thread:$0]  %s34_s26, 256, %s36_s28, [#allocation6], %s451_s9, %s451_s9, %s452_s10  }
   0x7   :  { %s453_s11 = smov [#allocation2]   ;;  %s48_s1 = sshll.u32 %s544_s3, 4  ;;  %s49_s1 = int_to_ptr.hbm [resolvable:$true] %s48_s1 }
   0x8   :  { %s22_s12 = sshll.u32 %s453_s11, 4  ;;  %s63_s16 = sshll.u32 %s546_s5, 4  ;;  %s23_s12 = int_to_ptr.vmem [resolvable:$true] %s22_s12  ;;  %s64_s16 = int_to_ptr.hbm [resolvable:$true] %s63_s16 }
   0x9   :  { %28 = dma.hbm_to_vmem [thread:$0]  %s21_s8, 256, %s23_s12, [#allocation3], %s451_s9, %s451_s9, %s452_s10  }
   0xa   :  { %s454_s17 = smov [#allocation7]   ;;  %s455_s19 = smov [#allocation8]  }
   0xb   :  { %s50_s18 = sshll.u32 %s454_s17, 4  ;;  %s65_s3 = sshll.u32 %s455_s19, 4  ;;  %s51_s18 = int_to_ptr.vmem [resolvable:$true] %s50_s18  ;;  %s66_s3 = int_to_ptr.vmem [resolvable:$true] %s65_s3 }
   0xc   :  { %56 = dma.hbm_to_vmem [thread:$0]  %s49_s1, 4096, %s51_s18, [#allocation6], %s451_s9, %s451_s9, %s452_s10  }
   0xd   :  { %71 = dma.hbm_to_vmem [thread:$0]  %s64_s16, 2048, %s66_s3, [#allocation9], %s451_s9, %s451_s9, %s452_s10  }
   0xe   :  { %442 = dma.done.wait [#allocation3], 256  }
   0xf   :  { %443 = vsyncadd [#allocation3], 4294967040 }
  0x10   :  { %444 = dma.done.wait [#allocation6], 4352  }
  0x11   :  { %445 = vsyncadd [#allocation6], 4294962944 }
  0x12   :  { %446 = dma.done.wait [#allocation9], 2048  }
  0x13   :  { %447 = vsyncadd [#allocation9], 4294965248  ;;  %v93_v0 = vld [vmem:[#allocation5 + $0x8] sm:$0xff]  ;;  %v92_v1 = vld [vmem:[#allocation5] sm:$0xff]  ;;  %vm98_vm0 = vcmask 130048   ;;  %s277_s29 = sshll.u32 %s548_s7, 4  ;;  %s278_s29 = int_to_ptr.hbm [resolvable:$true] %s277_s29 }
  0x14   :  { %119 = vmatpush.msra.mxu0 %v93_v0  ;;  %v90_v2 = vld [vmem:[#allocation2] sm:$0xff]  ;;  %v145_v3 = vld [vmem:[#allocation7 + $0x78] sm:$0xff]  ;;  %v144_v4 = vld [vmem:[#allocation7 + $0x70] sm:$0xff] }
  0x15   :  { %295 = vmatpush.msra.mxu1 %v145_v3  ;;  %v143_v5 = vld [vmem:[#allocation7 + $0x68] sm:$0xff]  ;;  %v142_v6 = vld [vmem:[#allocation7 + $0x60] sm:$0xff]  ;;  %v141_v8 = vld [vmem:[#allocation7 + $0x58] sm:$0xff] }
  0x16   :  { %120 = vmatpush.msra.mxu0 %v92_v1  ;;  %v91_v7 = vld [vmem:[#allocation2 + $0x8] sm:$0xff]  ;;  %v140_v9 = vld [vmem:[#allocation7 + $0x50] sm:$0xff]  ;;  %v138_v11 = vld [vmem:[#allocation7 + $0x40] sm:$0xff] }
  0x17   :  { %292 = vmatmul.msk.f32.vlgmr.msra.gmra.mxu0 %vm98_vm0, %v90_v2  ;;  %296 = vmatpush.msra.mxu1 %v144_v4  ;;  %v139_v10 = vld [vmem:[#allocation7 + $0x48] sm:$0xff]  ;;  %v137_v12 = vld [vmem:[#allocation7 + $0x38] sm:$0xff]  ;;  %v136_v13 = vld [vmem:[#allocation7 + $0x30] sm:$0xff] }
  0x18   :  { %150 = vmatpush.msrb.mxu0 %v145_v3  ;;  %v135_v14 = vld [vmem:[#allocation7 + $0x28] sm:$0xff]  ;;  %v134_v15 = vld [vmem:[#allocation7 + $0x20] sm:$0xff]  ;;  %v133_v16 = vld [vmem:[#allocation7 + $0x18] sm:$0xff] }
  0x19   :  { %297 = vmatpush.msra.mxu1 %v143_v5  ;;  %v132_v17 = vld [vmem:[#allocation7 + $0x10] sm:$0xff]  ;;  %v131_v18 = vld [vmem:[#allocation7 + $0x8] sm:$0xff]  ;;  %v130_v19 = vld [vmem:[#allocation7] sm:$0xff] }
  0x1a   :  { %151 = vmatpush.msrb.mxu0 %v144_v4  ;;  %v191_v20 = vld [vmem:[#allocation7 + $0xf8] sm:$0xff]  ;;  %v190_v21 = vld [vmem:[#allocation7 + $0xf0] sm:$0xff]  ;;  %v189_v22 = vld [vmem:[#allocation7 + $0xe8] sm:$0xff] }
  0x1b   :  { %298 = vmatpush.msra.mxu1 %v142_v6  ;;  %197 = vmatpush.msra.mxu2 %v191_v20  ;;  %v188_v23 = vld [vmem:[#allocation7 + $0xe0] sm:$0xff]  ;;  %v187_v24 = vld [vmem:[#allocation7 + $0xd8] sm:$0xff]  ;;  %v186_v25 = vld [vmem:[#allocation7 + $0xd0] sm:$0xff] }
  0x1c   :  { %152 = vmatpush.msrb.mxu0 %v143_v5  ;;  %v185_v26 = vld [vmem:[#allocation7 + $0xc8] sm:$0xff]  ;;  %v184_v27 = vld [vmem:[#allocation7 + $0xc0] sm:$0xff]  ;;  %v183_v28 = vld [vmem:[#allocation7 + $0xb8] sm:$0xff] }
  0x1d   :  { %299 = vmatpush.msra.mxu1 %v141_v8  ;;  %198 = vmatpush.msra.mxu2 %v190_v21  ;;  %v318_v29 = vld [vmem:[%s543_s2] ss:$0 sm:$0xff]  ;;  %v182_v30 = vld [vmem:[#allocation7 + $0xb0] sm:$0xff]  ;;  %v181_v31 = vld [vmem:[#allocation7 + $0xa8] sm:$0xff] }
  0x1e   :  { %153 = vmatpush.msrb.mxu0 %v142_v6  ;;  %v180_v34 = vld [vmem:[#allocation7 + $0xa0] sm:$0xff]  ;;  %v179_v36 = vld [vmem:[#allocation7 + $0x98] sm:$0xff]  ;;  %v178_v40 = vld [vmem:[#allocation7 + $0x90] sm:$0xff] }
  0x1f   :  { %293 = vmatmul.msk.f32.gmra.mxu0 %vm98_vm0, %v91_v7  ;;  %300 = vmatpush.msra.mxu1 %v140_v9  ;;  %v177_v41 = vld [vmem:[#allocation7 + $0x88] sm:$0xff]  ;;  %v176_v42 = vld [vmem:[#allocation7 + $0x80] sm:$0xff]  ;;  %v237_v43 = vld [vmem:[#allocation8 + $0x78] sm:$0xff] }
  0x20   :  { %154 = vmatpush.msrb.mxu0 %v141_v8  ;;  %199 = vmatpush.msra.mxu2 %v189_v22  ;;  %v236_v44 = vld [vmem:[#allocation8 + $0x70] sm:$0xff]  ;;  %v235_v45 = vld [vmem:[#allocation8 + $0x68] sm:$0xff]  ;;  %v234_v46 = vld [vmem:[#allocation8 + $0x60] sm:$0xff] }
  0x21   :  { %301 = vmatpush.msra.mxu1 %v139_v10  ;;  %242 = vmatpush.msra.mxu3 %v237_v43  ;;  %v233_v47 = vld [vmem:[#allocation8 + $0x58] sm:$0xff]  ;;  %v232_v48 = vld [vmem:[#allocation8 + $0x50] sm:$0xff]  ;;  %v231_v49 = vld [vmem:[#allocation8 + $0x48] sm:$0xff] }
  0x22   :  { %155 = vmatpush.msrb.mxu0 %v140_v9  ;;  %200 = vmatpush.msra.mxu2 %v188_v23  ;;  %v230_v50 = vld [vmem:[#allocation8 + $0x40] sm:$0xff]  ;;  %v229_v51 = vld [vmem:[#allocation8 + $0x38] sm:$0xff]  ;;  %v228_v53 = vld [vmem:[#allocation8 + $0x30] sm:$0xff] }
  0x23   :  { %302 = vmatpush.msra.mxu1 %v138_v11  ;;  %243 = vmatpush.msra.mxu3 %v236_v44  ;;  %v319_v52 = vld [vmem:[%s545_s4] ss:$0 sm:$0xff]  ;;  %v227_v54 = vld [vmem:[#allocation8 + $0x28] sm:$0xff]  ;;  %v225_v59 = vld [vmem:[#allocation8 + $0x18] sm:$0xff] }
  0x24   :  { %156 = vmatpush.msrb.mxu0 %v139_v10  ;;  %201 = vmatpush.msra.mxu2 %v187_v24  ;;  %v226_v57 = vld [vmem:[#allocation8 + $0x20] sm:$0xff]  ;;  %v224_v63 = vld [vmem:[#allocation8 + $0x10] sm:$0xff]  ;;  %v223_v0 = vld [vmem:[#allocation8 + $0x8] sm:$0xff] }
  0x25   :  { %303 = vmatpush.msra.mxu1 %v137_v12  ;;  %244 = vmatpush.msra.mxu3 %v235_v45  ;;  %v222_v1 = vld [vmem:[#allocation8] sm:$0xff] }
  0x26   :  { %157 = vmatpush.msrb.mxu0 %v138_v11  ;;  %202 = vmatpush.msra.mxu2 %v186_v25  ;;  %v320_v2 = vld [vmem:[%s545_s4 + $0x1] ss:$0 sm:$0xff]  ;;  %v321_v9 = vld [vmem:[%s547_s6] ss:$0 sm:$0xff]  ;;  %s456_s4 = smov [#allocation10]  }
  0x27   :  { %304 = vmatpush.msra.mxu1 %v136_v13  ;;  %245 = vmatpush.msra.mxu3 %v234_v46  ;;  %s275_s26 = sshll.u32 %s456_s4, 4  ;;  %s276_s26 = int_to_ptr.vmem [resolvable:$true] %s275_s26 }
  0x28   :  { %158 = vmatpush.msrb.mxu0 %v137_v12  ;;  %203 = vmatpush.msra.mxu2 %v185_v26 }
  0x29   :  { %305 = vmatpush.msra.mxu1 %v135_v14  ;;  %246 = vmatpush.msra.mxu3 %v233_v47 }
  0x2a   :  { %159 = vmatpush.msrb.mxu0 %v136_v13  ;;  %204 = vmatpush.msra.mxu2 %v184_v27 }
  0x2b   :  { %306 = vmatpush.msra.mxu1 %v134_v15  ;;  %247 = vmatpush.msra.mxu3 %v232_v48 }
  0x2c   :  { %160 = vmatpush.msrb.mxu0 %v135_v14  ;;  %205 = vmatpush.msra.mxu2 %v183_v28 }
  0x2d   :  { %307 = vmatpush.msra.mxu1 %v133_v16  ;;  %248 = vmatpush.msra.mxu3 %v231_v49 }
  0x2e   :  { %161 = vmatpush.msrb.mxu0 %v134_v15  ;;  %206 = vmatpush.msra.mxu2 %v182_v30 }
  0x2f   :  { %308 = vmatpush.msra.mxu1 %v132_v17  ;;  %249 = vmatpush.msra.mxu3 %v230_v50 }
  0x30   :  { %162 = vmatpush.msrb.mxu0 %v133_v16  ;;  %207 = vmatpush.msra.mxu2 %v181_v31 }
  0x31   :  { %309 = vmatpush.msra.mxu1 %v131_v18  ;;  %250 = vmatpush.msra.mxu3 %v229_v51 }
  0x32   :  { %163 = vmatpush.msrb.mxu0 %v132_v17  ;;  %208 = vmatpush.msra.mxu2 %v180_v34 }
  0x33   :  { %310 = vmatpush.msra.mxu1 %v130_v19  ;;  %251 = vmatpush.msra.mxu3 %v228_v53 }
  0x34   :  { %164 = vmatpush.msrb.mxu0 %v131_v18  ;;  %209 = vmatpush.msra.mxu2 %v179_v36 }
  0x35   :  { %252 = vmatpush.msra.mxu3 %v227_v54 }
  0x36   :  { %165 = vmatpush.msrb.mxu0 %v130_v19  ;;  %210 = vmatpush.msra.mxu2 %v178_v40 }
  0x37   :  { %253 = vmatpush.msra.mxu3 %v226_v57 }
  0x38   :  { %211 = vmatpush.msra.mxu2 %v177_v41 }
  0x39   :  { %254 = vmatpush.msra.mxu3 %v225_v59 }
  0x3a   :  { %212 = vmatpush.msra.mxu2 %v176_v42 }
  0x3b   :  { %255 = vmatpush.msra.mxu3 %v224_v63 }
  0x3d   :  { %256 = vmatpush.msra.mxu3 %v223_v0 }
  0x3f   :  { %257 = vmatpush.msra.mxu3 %v222_v1 }
  0x94   :  { %v122_v32 = vpop.f32.mrf.mxu0 }
  0x95   :  { %v123_v33 = vadd.f32 %v318_v29, %v122_v32 }
  0x97   :  { %v128_v35 = vmax.f32 %v123_v33, 0.0 }
  0x99   :  { %166 = vmatmul.f32.vlgmr.msrb.gmra.mxu0 %v128_v35 }
  0x9c   :  { %v125_v37 = vpop.f32.mrf.mxu0 }
  0x9d   :  { %v126_v38 = vadd.f32 %v318_v29, %v125_v37 }
  0x9f   :  { %v129_v39 = vmax.f32 %v126_v38, 0.0 }
  0xa1   :  { %169 = vmatmul.f32.vlgmr.msra.gmra.mxu1 %v129_v39 }
 0x116   :  { %v167_v55 = vpop.f32.mrf.mxu0 }
 0x117   :  { %v168_v56 = vadd.f32 %v319_v52, %v167_v55 }
 0x119   :  { %v173_v58 = vmax.f32 %v168_v56, 0.0 }
 0x11b   :  { %213 = vmatmul.f32.vlgmr.msra.gmra.mxu2 %v173_v58 }
 0x11e   :  { %v170_v60 = vpop.f32.mrf.mxu1 }
 0x11f   :  { %v171_v61 = vadd.f32 %v319_v52, %v170_v60 }
 0x121   :  { %v174_v62 = vmax.f32 %v171_v61, 0.0 }
 0x123   :  { %216 = vmatmul.f32.gmra.mxu2 %v174_v62 }
 0x19e   :  { %v214_v3 = vpop.f32.mrf.mxu2 }
 0x19f   :  { %v215_v4 = vadd.f32 %v320_v2, %v214_v3 }
 0x1a1   :  { %v220_v5 = vmax.f32 %v215_v4, 0.0 }
 0x1a3   :  { %258 = vmatmul.f32.vlgmr.msra.gmra.mxu3 %v220_v5 }
 0x1a6   :  { %v217_v6 = vpop.f32.mrf.mxu2 }
 0x1a7   :  { %v218_v7 = vadd.f32 %v320_v2, %v217_v6 }
 0x1a9   :  { %v221_v8 = vmax.f32 %v218_v7, 0.0 }
 0x1ab   :  { %261 = vmatmul.f32.gmra.mxu3 %v221_v8 }
 0x226   :  { %v259_v10 = vpop.f32.mrf.mxu3 }
 0x227   :  { %v260_v11 = vadd.f32 %v321_v9, %v259_v10 }
 0x229   :  { %v265_v12 = vmax.f32 %v260_v11, 0.0 }
 0x22b   :  { %v267_v13 = vmin.f32 %v265_v12, 1.0 }
 0x22d   :  { %269 = vst [vmem:[#allocation10] sm:$0xff] %v267_v13 }
 0x22e   :  { %v262_v14 = vpop.f32.mrf.mxu3 }
 0x22f   :  { %v263_v15 = vadd.f32 %v321_v9, %v262_v14 }
 0x231   :  { %v266_v16 = vmax.f32 %v263_v15, 0.0 }
 0x233   :  { %v268_v17 = vmin.f32 %v266_v16, 1.0 }
 0x235   :  { %270 = vst [vmem:[#allocation10 + $0x8] sm:$0xff] %v268_v17 }
 0x236   :  { %283 = dma.vmem_to_hbm [thread:$0]  %s276_s26, 256, %s278_s29, [#allocation4], %s451_s9, %s451_s9, %s452_s10  }
 0x237   :  { %448 = dma.done.wait [#allocation4], 256  }
 0x238   :  { %449 = vsyncadd [#allocation4], 4294967040 }
 0x239   :  { %288 = vsyncpa [#allocation3], 1 }
 0x23a   :  { %289 = vsyncpa [#allocation6], 1 }
 0x23b   :  { %290 = vsyncpa [#allocation9], 1 }
 0x23c   :  { %291 = vsyncpa [#allocation4], 1 }

</bundles_post_ra>
